<compile_context>
chip_gen: v6e
topology: v6e:2x2x1
jax: 0.10.0
libtpu: 0.0.40
codegen_flags: <defaults>
</compile_context>

<pallas_src>
import functools

import jax
import jax.numpy as jnp
from jax.experimental import pallas as pl
from jax.experimental.pallas import tpu as pltpu


# ----------------------------------------------------------------------------- helpers
def _instance_norm_rows(x, eps=1e-5):
    mu = jnp.mean(x, axis=-1, keepdims=True)
    var = jnp.mean((x - mu) * (x - mu), axis=-1, keepdims=True)
    return (x - mu) * jax.lax.rsqrt(var + eps)


def _vmem_capacity_bytes():
    try:
        return int(pltpu.get_tpu_info().vmem_capacity_bytes)
    except Exception:
        return 64 << 20  # conservative default (v7x per-core VMEM)


def _mxu_lane_width():
    """128 for v2..v5 parts (128x128 MXU), 256 for v6e/v7x (256x256 MXU)."""
    try:
        kind = jax.devices()[0].device_kind.lower()
        for tag in ("v2", "v3", "v4", "v5"):
            if tag in kind:
                return 128
    except Exception:
        pass
    return 256


def _choose_group(num_neighbors, num_hidden, max_lanes):
    """Largest divisor P of K with P*H <= max_lanes (falls back to 1)."""
    best = 1
    for p in range(1, num_neighbors + 1):
        if num_neighbors % p == 0 and p * num_hidden <= max_lanes:
            best = p
    return best


def _choose_tile_n(n, K, H, Cin, P, act_itemsize, weight_bytes):
    """Largest node tile keeping (streamed tiles + weights + f32 temps) in VMEM."""
    vmem = _vmem_capacity_bytes()
    per_node = (2 * (K * Cin * act_itemsize + H * 4)     # double-buffered h_E / h_V tiles
                + (4 * P * H + 12 * H) * 4)              # live f32 temps (MLP / FFN / norm)
    frac = 2 if vmem >= (96 << 20) else 3                # looser on 128 MiB parts (v5e/v6e)
    budget = vmem // frac - 2 * weight_bytes - (64 << 10)   # weights are double-buffered too
    tile = int(max(budget, per_node) // max(per_node, 1))
    tile = max(8, min(tile, 4096))
    tile = (tile // 128) * 128 if tile >= 128 else (tile // 8) * 8
    n8 = max(8, ((n + 7) // 8) * 8)
    return max(8, min(tile, n8))


def _block_diag(w, k):
    a, b = w.shape
    eye = jnp.eye(k, dtype=w.dtype)
    return jnp.einsum("kl,ab->kalb", eye, w).reshape(k * a, k * b)


def pack_params(params, num_neighbors, group_size, *, scale=30.0,
                compute_dtype=jnp.bfloat16):
    """Build the lane-dense / per-group block-diagonal weight set once (outside kernel)."""
    P, K = group_size, num_neighbors
    cast = lambda a: a.astype(compute_dtype)
    return dict(
        w1v=cast(jnp.tile(params["w1v"], (1, P))),               # [H, P*H]
        w1e=cast(_block_diag(params["w1e"], P)),                 # [P*Cin, P*H]
        b1=jnp.tile(params["b1"], (1, P)).astype(jnp.float32),   # [1, P*H]
        w2=cast(_block_diag(params["w2"], P)),                   # [P*H, P*H]
        b2=jnp.tile(params["b2"], (1, P)).astype(jnp.float32),   # [1, P*H]
        # W3 + within-group neighbor sum + /scale fused into one matmul:
        w3s=cast(jnp.tile(params["w3"], (P, 1)) / scale),        # [P*H, H]
        b3s=(params["b3"] * (K / scale)).astype(jnp.float32),    # [1, H] (added once)
        wd1=cast(params["wd1"]), bd1=params["bd1"].astype(jnp.float32),
        wd2=cast(params["wd2"]), bd2=params["bd2"].astype(jnp.float32),
    )


# ----------------------------------------------------------------------------- kernel
def mpnn_kernel(hV_ref, hE_ref,
                w1v_ref, w1e_ref, b1_ref,
                w2_ref, b2_ref,
                w3s_ref, b3s_ref,
                wd1_ref, bd1_ref,
                wd2_ref, bd2_ref,
                out_ref, *, tile_n, groups, group_in, rem_rows, needs_mask):
    cdt = w1v_ref.dtype                      # MXU operand dtype (bf16 by default)
    hV = hV_ref[...]                         # [TN, H]  f32 (kept exact for residual)
    hV_c = hV.astype(cdt)

    # node-side contribution to the first MLP layer: identical for every group -> hoist
    hv_pre = (jnp.dot(hV_c, w1v_ref[...], preferred_element_type=jnp.float32)
              + b1_ref[...])                                            # [TN, P*H]

    # --- grouped, lane-packed message MLP; W3 + neighbor-sum + /scale fused --------
    dh = b3s_ref[...]                                                   # [1, H] f32
    for g in range(groups):                  # static unroll; groups is tiny (1 or 2)
        hE_g = hE_ref[:, g * group_in:(g + 1) * group_in]               # [TN, P*Cin] cdt
        pre = hv_pre + jnp.dot(hE_g, w1e_ref[...],
                               preferred_element_type=jnp.float32)      # [TN, P*H]
        m = jnp.maximum(pre, 0.0)
        m = jnp.dot(m.astype(cdt), w2_ref[...],
                    preferred_element_type=jnp.float32) + b2_ref[...]   # [TN, P*H]
        m = jnp.maximum(m, 0.0)
        dh = dh + jnp.dot(m.astype(cdt), w3s_ref[...],
                          preferred_element_type=jnp.float32)           # [TN, H]

    # --- residual + InstanceNorm (dropout = identity in eval) ----------------------
    x = _instance_norm_rows(hV + dh)                                    # [TN, H]

    # --- position-wise FFN + residual + InstanceNorm --------------------------------
    ff = jnp.dot(x.astype(cdt), wd1_ref[...],
                 preferred_element_type=jnp.float32) + bd1_ref[...]     # [TN, 4H]
    ff = jnp.maximum(ff, 0.0)
    dh2 = jnp.dot(ff.astype(cdt), wd2_ref[...],
                  preferred_element_type=jnp.float32) + bd2_ref[...]    # [TN, H]
    x = _instance_norm_rows(x + dh2)                                    # [TN, H]

    # --- per-tile partial sum for the final mean over nodes -------------------------
    def _emit(v):
        partial = jnp.sum(v, axis=0, keepdims=True)                     # [1, H]
        out_ref[...] = jnp.broadcast_to(partial, out_ref.shape)

    if needs_mask:
        is_last = pl.program_id(0) == pl.num_programs(0) - 1

        @pl.when(is_last)                    # remainder masking only on the last tile
        def _():
            row = jax.lax.broadcasted_iota(jnp.int32, (tile_n, 1), 0)
            _emit(jnp.where(row < rem_rows, x, 0.0))

        @pl.when(pl.program_id(0) != pl.num_programs(0) - 1)
        def _():
            _emit(x)
    else:
        _emit(x)


# ----------------------------------------------------------------------------- wrapper
def mpnn_forward(h_V, h_E, params, *, scale=30.0,
                 compute_dtype=jnp.bfloat16, tile_n=None, max_group_lanes=None):
    N, H = h_V.shape
    _, K, Cin = h_E.shape
    act_itemsize = jnp.dtype(compute_dtype).itemsize

    # neighbor grouping sized to the MXU: P*H <= 128 on v5-class, <= 256 on v6e/v7x
    if max_group_lanes is None:
        max_group_lanes = _mxu_lane_width()
    P = _choose_group(K, H, max_group_lanes)
    G = K // P

    packed = pack_params(params, K, P, scale=scale, compute_dtype=compute_dtype)
    weights = (packed["w1v"], packed["w1e"], packed["b1"],
               packed["w2"], packed["b2"],
               packed["w3s"], packed["b3s"],
               packed["wd1"], packed["bd1"],
               packed["wd2"], packed["bd2"])
    weight_bytes = sum(int(w.size) * jnp.dtype(w.dtype).itemsize for w in weights)

    if tile_n is None:
        tile_n = _choose_tile_n(N, K, H, Cin, P, act_itemsize, weight_bytes)
    tile_n = max(8, (int(tile_n) // 8) * 8)
    num_tiles = int(pl.cdiv(N, tile_n))
    n_pad = num_tiles * tile_n
    rem_rows = N - (num_tiles - 1) * tile_n
    needs_mask = bool(n_pad != N)

    # wrapper-side layout plumbing: lane-dense [N, K*Cin] slab streamed in compute_dtype
    hE_flat = h_E.reshape(N, K * Cin).astype(compute_dtype)
    hV = h_V.astype(jnp.float32)
    if n_pad != N:
        hV = jnp.pad(hV, ((0, n_pad - N), (0, 0)))
        hE_flat = jnp.pad(hE_flat, ((0, n_pad - N), (0, 0)))

    def _resident(arr):
        return pl.BlockSpec(arr.shape, lambda i: (0, 0))  # stays in VMEM across the grid

    vmem = _vmem_capacity_bytes()
    # dense FLOPs actually pushed through the MXU (grouped block-diagonal matmuls)
    flops_per_node = (2 * H * (P * H)                       # h_V @ tiled(W1v), hoisted
                      + G * (2 * (P * Cin) * (P * H)        # h_E_g @ blockdiag(W1e)
                             + 2 * (P * H) * (P * H)        # @ blockdiag(W2)
                             + 2 * (P * H) * H)             # @ tiled(W3)/scale
                      + 16 * H * H)                         # FFN
    flops = flops_per_node * n_pad
    bytes_accessed = (hV.size * 4 + hE_flat.size * act_itemsize
                      + weight_bytes + num_tiles * 8 * H * 4)

    kernel = functools.partial(mpnn_kernel, tile_n=tile_n, groups=G,
                               group_in=P * Cin, rem_rows=rem_rows,
                               needs_mask=needs_mask)
    partials = pl.pallas_call(
        kernel,
        out_shape=jax.ShapeDtypeStruct((num_tiles * 8, H), jnp.float32),
        grid_spec=pltpu.PrefetchScalarGridSpec(
            num_scalar_prefetch=0,
            grid=(num_tiles,),
            in_specs=[pl.BlockSpec((tile_n, H), lambda i: (i, 0)),          # h_V (f32)
                      pl.BlockSpec((tile_n, K * Cin), lambda i: (i, 0))]    # h_E slab
                     + [_resident(w) for w in weights],
            out_specs=pl.BlockSpec((8, H), lambda i: (i, 0)),
        ),
        compiler_params=pltpu.CompilerParams(
            dimension_semantics=("parallel",),            # v7x: shard node tiles over both TCs
            vmem_limit_bytes=int(min(int(0.8 * vmem), 96 << 20)),
        ),
        cost_estimate=pl.CostEstimate(flops=int(flops), transcendentals=2 * N,
                                      bytes_accessed=int(bytes_accessed)),
    )(hV, hE_flat, *weights)

    # tiny XLA epilogue: reduce per-tile partial sums -> mean over nodes
    return partials.reshape(num_tiles, 8, H)[:, 0, :].sum(axis=0) / N


# ----------------------------------------------------------------------------- reference
def mpnn_reference(h_V, h_E, params, *, scale=30.0):
    N, K, Cin = h_E.shape
    H = h_V.shape[-1]
    h_V_exp = jnp.broadcast_to(h_V[:, None, :], (N, K, H))
    h_EV = jnp.concatenate([h_V_exp, h_E], axis=-1)
    W1 = jnp.concatenate([params["w1v"], params["w1e"]], axis=0)
    m = jax.nn.relu(h_EV @ W1 + params["b1"][0])
    m = jax.nn.relu(m @ params["w2"] + params["b2"][0])
    m = m @ params["w3"] + params["b3"][0]
    dh = jnp.sum(m, axis=-2) / scale
    x = _instance_norm_rows(h_V + dh)
    ff = jax.nn.relu(x @ params["wd1"] + params["bd1"][0])
    dh2 = ff @ params["wd2"] + params["bd2"][0]
    x = _instance_norm_rows(x + dh2)
    return jnp.mean(x, axis=0)


def init_params(key, num_hidden, num_in):
    H, C = num_hidden, num_in
    ks = jax.random.split(key, 5)

    def lin(k, fan_in, fan_out):
        bound = 1.0 / jnp.sqrt(fan_in)
        kw, kb = jax.random.split(k)
        w = jax.random.uniform(kw, (fan_in, fan_out), jnp.float32, -bound, bound)
        b = jax.random.uniform(kb, (1, fan_out), jnp.float32, -bound, bound)
        return w, b

    w1, b1 = lin(ks[0], H + C, H)
    w2, b2 = lin(ks[1], H, H)
    w3, b3 = lin(ks[2], H, H)
    wd1, bd1 = lin(ks[3], H, 4 * H)
    wd2, bd2 = lin(ks[4], 4 * H, H)
    return {"w1v": w1[:H], "w1e": w1[H:], "b1": b1,
            "w2": w2, "b2": b2, "w3": w3, "b3": b3,
            "wd1": wd1, "bd1": bd1, "wd2": wd2, "bd2": bd2}


if __name__ == "__main__":
    num_hidden = 32   # H
    num_in = 32       # edge feature dim (Cin)
    scale = 30.0

    key = jax.random.PRNGKey(0)
    k_v, k_e, k_p = jax.random.split(key, 3)
    params = init_params(k_p, num_hidden, num_in)

    # --- small demo shape (single tile), f32 path, tight tolerance ----------
    N, K = 8, 8
    h_V = jax.random.normal(k_v, (N, num_hidden), jnp.float32)
    h_E = jax.random.normal(k_e, (N, K, num_in), jnp.float32)
    ref = jax.block_until_ready(mpnn_reference(h_V, h_E, params, scale=scale))

    out_f32 = jax.block_until_ready(
        mpnn_forward(h_V, h_E, params, scale=scale, compute_dtype=jnp.float32))
    assert out_f32.shape == (num_hidden,)
    assert jnp.allclose(out_f32, ref, atol=1e-3, rtol=1e-3), "f32 mismatch vs reference"

    # --- multi-tile grid + padded-remainder masking --------------------------
    N2, K2 = 200, 8
    k_v2, k_e2 = jax.random.split(jax.random.fold_in(key, 1))
    h_V2 = jax.random.normal(k_v2, (N2, num_hidden), jnp.float32)
    h_E2 = jax.random.normal(k_e2, (N2, K2, num_in), jnp.float32)
    ref2 = jax.block_until_ready(mpnn_reference(h_V2, h_E2, params, scale=scale))

    out2_f32 = jax.block_until_ready(
        mpnn_forward(h_V2, h_E2, params, scale=scale, tile_n=64,
                     compute_dtype=jnp.float32))
    assert jnp.allclose(out2_f32, ref2, atol=1e-3, rtol=1e-3), "multi-tile f32 mismatch"

    # grouped path (two 128-lane quadrants), as used on 128x128-MXU (v5e) parts
    out2_grp = jax.block_until_ready(
        mpnn_forward(h_V2, h_E2, params, scale=scale, tile_n=64,
                     compute_dtype=jnp.float32, max_group_lanes=128))
    assert jnp.allclose(out2_grp, ref2, atol=1e-3, rtol=1e-3), "grouped-path mismatch"

    # default path: bf16 streaming / MXU operands with f32 accumulation
    out2_bf16 = jax.block_until_ready(
        mpnn_forward(h_V2, h_E2, params, scale=scale, tile_n=64))
    assert jnp.all(jnp.isfinite(out2_bf16))
    assert float(jnp.max(jnp.abs(out2_bf16 - ref2))) < 0.1, "bf16 path too far from reference"

    print("KERNEL_OK")
</pallas_src>

<mosaic_0001>
module attributes {stable_mosaic.version = 11 : i64} {
  func.func @mpnn_kernel(%arg0: i32, %arg1: memref<8x32xf32, #tpu.memory_space<vmem>>, %arg2: memref<8x256xf32, #tpu.memory_space<vmem>>, %arg3: memref<32x256xf32, #tpu.memory_space<vmem>>, %arg4: memref<256x256xf32, #tpu.memory_space<vmem>>, %arg5: memref<1x256xf32, #tpu.memory_space<vmem>>, %arg6: memref<256x256xf32, #tpu.memory_space<vmem>>, %arg7: memref<1x256xf32, #tpu.memory_space<vmem>>, %arg8: memref<256x32xf32, #tpu.memory_space<vmem>>, %arg9: memref<1x32xf32, #tpu.memory_space<vmem>>, %arg10: memref<32x128xf32, #tpu.memory_space<vmem>>, %arg11: memref<1x128xf32, #tpu.memory_space<vmem>>, %arg12: memref<128x32xf32, #tpu.memory_space<vmem>>, %arg13: memref<1x32xf32, #tpu.memory_space<vmem>>, %arg14: memref<8x32xf32, #tpu.memory_space<vmem>>) attributes {dimension_semantics = [#tpu.dimension_semantics<parallel>], iteration_bounds = array<i64: 1>, scalar_prefetch = 0 : i64, scratch_operands = 0 : i64, tpu.core_type = #tpu.core_type<tc>, window_params = [{transform_indices = @transform_0, window_bounds = array<i64: 8, 32>}, {transform_indices = @transform_1, window_bounds = array<i64: 8, 256>}, {pipeline_mode = #tpu.pipeline_mode<synchronous>, transform_indices = @transform_2, window_bounds = array<i64: 32, 256>}, {pipeline_mode = #tpu.pipeline_mode<synchronous>, transform_indices = @transform_3, window_bounds = array<i64: 256, 256>}, {pipeline_mode = #tpu.pipeline_mode<synchronous>, transform_indices = @transform_4, window_bounds = array<i64: 1, 256>}, {pipeline_mode = #tpu.pipeline_mode<synchronous>, transform_indices = @transform_5, window_bounds = array<i64: 256, 256>}, {pipeline_mode = #tpu.pipeline_mode<synchronous>, transform_indices = @transform_6, window_bounds = array<i64: 1, 256>}, {pipeline_mode = #tpu.pipeline_mode<synchronous>, transform_indices = @transform_7, window_bounds = array<i64: 256, 32>}, {pipeline_mode = #tpu.pipeline_mode<synchronous>, transform_indices = @transform_8, window_bounds = array<i64: 1, 32>}, {pipeline_mode = #tpu.pipeline_mode<synchronous>, transform_indices = @transform_9, window_bounds = array<i64: 32, 128>}, {pipeline_mode = #tpu.pipeline_mode<synchronous>, transform_indices = @transform_10, window_bounds = array<i64: 1, 128>}, {pipeline_mode = #tpu.pipeline_mode<synchronous>, transform_indices = @transform_11, window_bounds = array<i64: 128, 32>}, {pipeline_mode = #tpu.pipeline_mode<synchronous>, transform_indices = @transform_12, window_bounds = array<i64: 1, 32>}, {transform_indices = @transform_13, window_bounds = array<i64: 8, 32>}]} {
    %c0 = arith.constant 0 : index
    %c0_0 = arith.constant 0 : index
    %0 = vector.load %arg1[%c0, %c0_0] : memref<8x32xf32, #tpu.memory_space<vmem>>, vector<8x32xf32>
    %c0_1 = arith.constant 0 : index
    %c0_2 = arith.constant 0 : index
    %1 = vector.load %arg3[%c0_1, %c0_2] : memref<32x256xf32, #tpu.memory_space<vmem>>, vector<32x256xf32>
    %cst = arith.constant dense<0.000000e+00> : vector<8x256xf32>
    %2 = tpu.matmul %0, %1, %cst {dimension_numbers = #tpu.dot_dimension_numbers<[1], [0], [0], [1], [0, 0, 1, 1], [], []>} : vector<8x32xf32>, vector<32x256xf32>, vector<8x256xf32> -> vector<8x256xf32>
    %c0_3 = arith.constant 0 : index
    %c0_4 = arith.constant 0 : index
    %3 = vector.load %arg5[%c0_3, %c0_4] : memref<1x256xf32, #tpu.memory_space<vmem>>, vector<1x256xf32>
    %4 = vector.broadcast %3 : vector<1x256xf32> to vector<8x256xf32>
    %5 = arith.addf %2, %4 : vector<8x256xf32>
    %c0_5 = arith.constant 0 : index
    %c0_6 = arith.constant 0 : index
    %6 = vector.load %arg9[%c0_5, %c0_6] : memref<1x32xf32, #tpu.memory_space<vmem>>, vector<1x32xf32>
    %c0_7 = arith.constant 0 : index
    %c0_8 = arith.constant 0 : index
    %7 = vector.load %arg2[%c0_7, %c0_8] : memref<8x256xf32, #tpu.memory_space<vmem>>, vector<8x256xf32>
    %c0_9 = arith.constant 0 : index
    %c0_10 = arith.constant 0 : index
    %8 = vector.load %arg4[%c0_9, %c0_10] : memref<256x256xf32, #tpu.memory_space<vmem>>, vector<256x256xf32>
    %cst_11 = arith.constant dense<0.000000e+00> : vector<8x256xf32>
    %9 = tpu.matmul %7, %8, %cst_11 {dimension_numbers = #tpu.dot_dimension_numbers<[1], [0], [0], [1], [0, 0, 1, 1], [], []>} : vector<8x256xf32>, vector<256x256xf32>, vector<8x256xf32> -> vector<8x256xf32>
    %10 = arith.addf %5, %9 : vector<8x256xf32>
    %cst_12 = arith.constant 0.000000e+00 : f32
    %11 = vector.broadcast %cst_12 : f32 to vector<8x256xf32>
    %12 = arith.maximumf %10, %11 : vector<8x256xf32>
    %c0_13 = arith.constant 0 : index
    %c0_14 = arith.constant 0 : index
    %13 = vector.load %arg6[%c0_13, %c0_14] : memref<256x256xf32, #tpu.memory_space<vmem>>, vector<256x256xf32>
    %cst_15 = arith.constant dense<0.000000e+00> : vector<8x256xf32>
    %14 = tpu.matmul %12, %13, %cst_15 {dimension_numbers = #tpu.dot_dimension_numbers<[1], [0], [0], [1], [0, 0, 1, 1], [], []>} : vector<8x256xf32>, vector<256x256xf32>, vector<8x256xf32> -> vector<8x256xf32>
    %c0_16 = arith.constant 0 : index
    %c0_17 = arith.constant 0 : index
    %15 = vector.load %arg7[%c0_16, %c0_17] : memref<1x256xf32, #tpu.memory_space<vmem>>, vector<1x256xf32>
    %16 = vector.broadcast %15 : vector<1x256xf32> to vector<8x256xf32>
    %17 = arith.addf %14, %16 : vector<8x256xf32>
    %cst_18 = arith.constant 0.000000e+00 : f32
    %18 = vector.broadcast %cst_18 : f32 to vector<8x256xf32>
    %19 = arith.maximumf %17, %18 : vector<8x256xf32>
    %c0_19 = arith.constant 0 : index
    %c0_20 = arith.constant 0 : index
    %20 = vector.load %arg8[%c0_19, %c0_20] : memref<256x32xf32, #tpu.memory_space<vmem>>, vector<256x32xf32>
    %cst_21 = arith.constant dense<0.000000e+00> : vector<8x32xf32>
    %21 = tpu.matmul %19, %20, %cst_21 {dimension_numbers = #tpu.dot_dimension_numbers<[1], [0], [0], [1], [0, 0, 1, 1], [], []>} : vector<8x256xf32>, vector<256x32xf32>, vector<8x32xf32> -> vector<8x32xf32>
    %22 = vector.broadcast %6 : vector<1x32xf32> to vector<8x32xf32>
    %23 = arith.addf %22, %21 : vector<8x32xf32>
    %24 = arith.addf %0, %23 : vector<8x32xf32>
    %cst_22 = arith.constant dense<0.000000e+00> : vector<8xf32>
    %25 = vector.multi_reduction <add>, %24, %cst_22 [1] : vector<8x32xf32> to vector<8xf32>
    %26 = vector.shape_cast %25 : vector<8xf32> to vector<8x1xf32>
    %cst_23 = arith.constant 3.200000e+01 : f32
    %27 = vector.broadcast %cst_23 : f32 to vector<8x1xf32>
    %28 = arith.divf %26, %27 : vector<8x1xf32>
    %29 = vector.broadcast %28 : vector<8x1xf32> to vector<8x32xf32>
    %30 = arith.subf %24, %29 : vector<8x32xf32>
    %31 = vector.broadcast %28 : vector<8x1xf32> to vector<8x32xf32>
    %32 = arith.subf %24, %31 : vector<8x32xf32>
    %33 = arith.mulf %30, %32 : vector<8x32xf32>
    %cst_24 = arith.constant dense<0.000000e+00> : vector<8xf32>
    %34 = vector.multi_reduction <add>, %33, %cst_24 [1] : vector<8x32xf32> to vector<8xf32>
    %35 = vector.shape_cast %34 : vector<8xf32> to vector<8x1xf32>
    %cst_25 = arith.constant 3.200000e+01 : f32
    %36 = vector.broadcast %cst_25 : f32 to vector<8x1xf32>
    %37 = arith.divf %35, %36 : vector<8x1xf32>
    %38 = vector.broadcast %28 : vector<8x1xf32> to vector<8x32xf32>
    %39 = arith.subf %24, %38 : vector<8x32xf32>
    %cst_26 = arith.constant 9.99999974E-6 : f32
    %40 = vector.broadcast %cst_26 : f32 to vector<8x1xf32>
    %41 = arith.addf %37, %40 : vector<8x1xf32>
    %42 = math.rsqrt %41 : vector<8x1xf32>
    %43 = vector.broadcast %42 : vector<8x1xf32> to vector<8x32xf32>
    %44 = arith.mulf %39, %43 : vector<8x32xf32>
    %c0_27 = arith.constant 0 : index
    %c0_28 = arith.constant 0 : index
    %45 = vector.load %arg10[%c0_27, %c0_28] : memref<32x128xf32, #tpu.memory_space<vmem>>, vector<32x128xf32>
    %cst_29 = arith.constant dense<0.000000e+00> : vector<8x128xf32>
    %46 = tpu.matmul %44, %45, %cst_29 {dimension_numbers = #tpu.dot_dimension_numbers<[1], [0], [0], [1], [0, 0, 1, 1], [], []>} : vector<8x32xf32>, vector<32x128xf32>, vector<8x128xf32> -> vector<8x128xf32>
    %c0_30 = arith.constant 0 : index
    %c0_31 = arith.constant 0 : index
    %47 = vector.load %arg11[%c0_30, %c0_31] : memref<1x128xf32, #tpu.memory_space<vmem>>, vector<1x128xf32>
    %48 = vector.broadcast %47 : vector<1x128xf32> to vector<8x128xf32>
    %49 = arith.addf %46, %48 : vector<8x128xf32>
    %cst_32 = arith.constant 0.000000e+00 : f32
    %50 = vector.broadcast %cst_32 : f32 to vector<8x128xf32>
    %51 = arith.maximumf %49, %50 : vector<8x128xf32>
    %c0_33 = arith.constant 0 : index
    %c0_34 = arith.constant 0 : index
    %52 = vector.load %arg12[%c0_33, %c0_34] : memref<128x32xf32, #tpu.memory_space<vmem>>, vector<128x32xf32>
    %cst_35 = arith.constant dense<0.000000e+00> : vector<8x32xf32>
    %53 = tpu.matmul %51, %52, %cst_35 {dimension_numbers = #tpu.dot_dimension_numbers<[1], [0], [0], [1], [0, 0, 1, 1], [], []>} : vector<8x128xf32>, vector<128x32xf32>, vector<8x32xf32> -> vector<8x32xf32>
    %c0_36 = arith.constant 0 : index
    %c0_37 = arith.constant 0 : index
    %54 = vector.load %arg13[%c0_36, %c0_37] : memref<1x32xf32, #tpu.memory_space<vmem>>, vector<1x32xf32>
    %55 = vector.broadcast %54 : vector<1x32xf32> to vector<8x32xf32>
    %56 = arith.addf %53, %55 : vector<8x32xf32>
    %57 = arith.addf %44, %56 : vector<8x32xf32>
    %cst_38 = arith.constant dense<0.000000e+00> : vector<8xf32>
    %58 = vector.multi_reduction <add>, %57, %cst_38 [1] : vector<8x32xf32> to vector<8xf32>
    %59 = vector.shape_cast %58 : vector<8xf32> to vector<8x1xf32>
    %cst_39 = arith.constant 3.200000e+01 : f32
    %60 = vector.broadcast %cst_39 : f32 to vector<8x1xf32>
    %61 = arith.divf %59, %60 : vector<8x1xf32>
    %62 = vector.broadcast %61 : vector<8x1xf32> to vector<8x32xf32>
    %63 = arith.subf %57, %62 : vector<8x32xf32>
    %64 = vector.broadcast %61 : vector<8x1xf32> to vector<8x32xf32>
    %65 = arith.subf %57, %64 : vector<8x32xf32>
    %66 = arith.mulf %63, %65 : vector<8x32xf32>
    %cst_40 = arith.constant dense<0.000000e+00> : vector<8xf32>
    %67 = vector.multi_reduction <add>, %66, %cst_40 [1] : vector<8x32xf32> to vector<8xf32>
    %68 = vector.shape_cast %67 : vector<8xf32> to vector<8x1xf32>
    %cst_41 = arith.constant 3.200000e+01 : f32
    %69 = vector.broadcast %cst_41 : f32 to vector<8x1xf32>
    %70 = arith.divf %68, %69 : vector<8x1xf32>
    %71 = vector.broadcast %61 : vector<8x1xf32> to vector<8x32xf32>
    %72 = arith.subf %57, %71 : vector<8x32xf32>
    %cst_42 = arith.constant 9.99999974E-6 : f32
    %73 = vector.broadcast %cst_42 : f32 to vector<8x1xf32>
    %74 = arith.addf %70, %73 : vector<8x1xf32>
    %75 = math.rsqrt %74 : vector<8x1xf32>
    %76 = vector.broadcast %75 : vector<8x1xf32> to vector<8x32xf32>
    %77 = arith.mulf %72, %76 : vector<8x32xf32>
    %cst_43 = arith.constant dense<0.000000e+00> : vector<32xf32>
    %78 = vector.multi_reduction <add>, %77, %cst_43 [0] : vector<8x32xf32> to vector<32xf32>
    %79 = vector.shape_cast %78 : vector<32xf32> to vector<1x32xf32>
    %80 = vector.shape_cast %79 : vector<1x32xf32> to vector<1x32xf32>
    %81 = vector.broadcast %80 : vector<1x32xf32> to vector<8x32xf32>
    %c0_44 = arith.constant 0 : index
    %c0_45 = arith.constant 0 : index
    %82 = vector.load %arg14[%c0_44, %c0_45] : memref<8x32xf32, #tpu.memory_space<vmem>>, vector<8x32xf32>
    tpu.vector_store %arg14[%c0_44, %c0_45], %81 {strides = array<i32>} : memref<8x32xf32, #tpu.memory_space<vmem>>, vector<8x32xf32>,
    return
  }
  func.func @transform_0(%arg0: i32) -> (i32, i32) {
    %c0_i32 = arith.constant 0 : i32
    %c0_i32_0 = arith.constant 0 : i32
    return %arg0, %c0_i32 : i32, i32
  }
  func.func @transform_1(%arg0: i32) -> (i32, i32) {
    %c0_i32 = arith.constant 0 : i32
    %c0_i32_0 = arith.constant 0 : i32
    return %arg0, %c0_i32 : i32, i32
  }
  func.func @transform_2(%arg0: i32) -> (i32, i32) {
    %c0_i32 = arith.constant 0 : i32
    %c0_i32_0 = arith.constant 0 : i32
    %c0_i32_1 = arith.constant 0 : i32
    return %c0_i32, %c0_i32_0 : i32, i32
  }
  func.func @transform_3(%arg0: i32) -> (i32, i32) {
    %c0_i32 = arith.constant 0 : i32
    %c0_i32_0 = arith.constant 0 : i32
    %c0_i32_1 = arith.constant 0 : i32
    return %c0_i32, %c0_i32_0 : i32, i32
  }
  func.func @transform_4(%arg0: i32) -> (i32, i32) {
    %c0_i32 = arith.constant 0 : i32
    %c0_i32_0 = arith.constant 0 : i32
    %c0_i32_1 = arith.constant 0 : i32
    return %c0_i32, %c0_i32_0 : i32, i32
  }
  func.func @transform_5(%arg0: i32) -> (i32, i32) {
    %c0_i32 = arith.constant 0 : i32
    %c0_i32_0 = arith.constant 0 : i32
    %c0_i32_1 = arith.constant 0 : i32
    return %c0_i32, %c0_i32_0 : i32, i32
  }
  func.func @transform_6(%arg0: i32) -> (i32, i32) {
    %c0_i32 = arith.constant 0 : i32
    %c0_i32_0 = arith.constant 0 : i32
    %c0_i32_1 = arith.constant 0 : i32
    return %c0_i32, %c0_i32_0 : i32, i32
  }
  func.func @transform_7(%arg0: i32) -> (i32, i32) {
    %c0_i32 = arith.constant 0 : i32
    %c0_i32_0 = arith.constant 0 : i32
    %c0_i32_1 = arith.constant 0 : i32
    return %c0_i32, %c0_i32_0 : i32, i32
  }
  func.func @transform_8(%arg0: i32) -> (i32, i32) {
    %c0_i32 = arith.constant 0 : i32
    %c0_i32_0 = arith.constant 0 : i32
    %c0_i32_1 = arith.constant 0 : i32
    return %c0_i32, %c0_i32_0 : i32, i32
  }
  func.func @transform_9(%arg0: i32) -> (i32, i32) {
    %c0_i32 = arith.constant 0 : i32
    %c0_i32_0 = arith.constant 0 : i32
    %c0_i32_1 = arith.constant 0 : i32
    return %c0_i32, %c0_i32_0 : i32, i32
  }
  func.func @transform_10(%arg0: i32) -> (i32, i32) {
    %c0_i32 = arith.constant 0 : i32
    %c0_i32_0 = arith.constant 0 : i32
    %c0_i32_1 = arith.constant 0 : i32
    return %c0_i32, %c0_i32_0 : i32, i32
  }
  func.func @transform_11(%arg0: i32) -> (i32, i32) {
    %c0_i32 = arith.constant 0 : i32
    %c0_i32_0 = arith.constant 0 : i32
    %c0_i32_1 = arith.constant 0 : i32
    return %c0_i32, %c0_i32_0 : i32, i32
  }
  func.func @transform_12(%arg0: i32) -> (i32, i32) {
    %c0_i32 = arith.constant 0 : i32
    %c0_i32_0 = arith.constant 0 : i32
    %c0_i32_1 = arith.constant 0 : i32
    return %c0_i32, %c0_i32_0 : i32, i32
  }
  func.func @transform_13(%arg0: i32) -> (i32, i32) {
    %c0_i32 = arith.constant 0 : i32
    %c0_i32_0 = arith.constant 0 : i32
    return %arg0, %c0_i32 : i32, i32
  }
}

</mosaic_0001>

<bundles_post_ra>
// kernel: tpu_custom_call.1
= control target key start
LH: loop header
LB: loop body
LE: loop exit
PB: predicated region body
PF: predicated region fallthrough
CT: control target
= control target key end

     0   :  { %18 = vsyncpa [#allocation3], 0  ;;  %s1312_s0 = inlined_call_operand.vmem [shape: f32[8,32], index: 0, kind: input, shape index: {}]   ;;  %s1313_s1 = inlined_call_operand.vmem [shape: f32[8,256], index: 1, kind: input, shape index: {}]   ;;  %s1314_s2 = inlined_call_operand.vmem [shape: f32[32,256], index: 2, kind: input, shape index: {}]   ;;  %s1315_s3 = inlined_call_operand.hbm [shape: f32[256,256], index: 3, kind: input, shape index: {}]   ;;  %s1316_s4 = inlined_call_operand.vmem [shape: f32[1,256], index: 4, kind: input, shape index: {}]   ;;  %s1317_s5 = inlined_call_operand.hbm [shape: f32[256,256], index: 5, kind: input, shape index: {}]   ;;  %s1318_s6 = inlined_call_operand.vmem [shape: f32[1,256], index: 6, kind: input, shape index: {}]   ;;  %s1319_s7 = inlined_call_operand.vmem [shape: f32[256,32], index: 7, kind: input, shape index: {}]   ;;  %s1320_s8 = inlined_call_operand.vmem [shape: f32[1,32], index: 8, kind: input, shape index: {}]   ;;  %s1321_s9 = inlined_call_operand.vmem [shape: f32[32,128], index: 9, kind: input, shape index: {}]   ;;  %s1322_s10 = inlined_call_operand.vmem [shape: f32[1,128], index: 10, kind: input, shape index: {}]   ;;  %s1323_s11 = inlined_call_operand.vmem [shape: f32[128,32], index: 11, kind: input, shape index: {}]   ;;  %s1324_s12 = inlined_call_operand.vmem [shape: f32[1,32], index: 12, kind: input, shape index: {}]   ;;  %s1325_s13 = inlined_call_operand.hbm [shape: f32[8,32], index: 13, kind: output, shape index: {}]  }
   0x1   :  { %19 = vsyncpa [#allocation6], 0 }
   0x2   :  { %20 = vsyncpa [#allocation4], 0  ;;  %s985_s25 = smov [#allocation2]  }
   0x3   :  { %s32_s26 = sshll.u32 %s985_s25, 4  ;;  %s33_s26 = int_to_ptr.vmem [resolvable:$true] %s32_s26 }
   0x4   :  { %s927_s27 = scalar_lea.vmem %s33_s26, 8192  ;;  %p932_p1 = scmp.lt.s32.totalorder %s33_s26, %s33_s26 }
   0x5   :  { %p928_p0 = scmp.ne.s32.totalorder %s33_s26, %s927_s27  ;;  %p933_p2 = scmp.lt.s32.totalorder %s927_s27, %s927_s27 }
   0x7   :  { %p934_p3 = por %p933_p2, %p932_p1 }
   0x9   :  { %p935_p4 = pnand %p934_p3, %p928_p0 }
   0xb   :  { %938 = shalt.err (!%p935_p4)
}
   0xc   :  { %s986_s28 = smov 256   ;;  %s987_s29 = smov 16  }
   0xd   :  { %38 = dma.hbm_to_vmem [thread:$0]  %s1315_s3, 8192, %s33_s26, [#allocation3], %s986_s28, %s986_s28, %s987_s29  }
   0xe   :  { %s988_s15 = smov [#allocation5]  }
   0xf   :  { %s46_s16 = sshll.u32 %s988_s15, 4  ;;  %s47_s16 = int_to_ptr.vmem [resolvable:$true] %s46_s16 }
  0x10   :  { %s947_s17 = scalar_lea.vmem %s47_s16, 8192  ;;  %p952_p6 = scmp.lt.s32.totalorder %s47_s16, %s47_s16 }
  0x11   :  { %p948_p5 = scmp.ne.s32.totalorder %s47_s16, %s947_s17  ;;  %p953_p7 = scmp.lt.s32.totalorder %s947_s17, %s947_s17 }
  0x13   :  { %p954_p8 = por %p953_p7, %p952_p6 }
  0x15   :  { %p955_p9 = pnand %p954_p8, %p948_p5 }
  0x17   :  { %958 = shalt.err (!%p955_p9)
}
  0x18   :  { %52 = dma.hbm_to_vmem [thread:$0]  %s1317_s5, 8192, %s47_s16, [#allocation6], %s986_s28, %s986_s28, %s987_s29  }
  0x19   :  { %979 = dma.done.wait [#allocation3], 8192  }
  0x1a   :  { %980 = vsyncadd [#allocation3], 4294959104 }
  0x1b   :  { %981 = dma.done.wait [#allocation6], 8192  }
  0x1c   :  { %982 = vsyncadd [#allocation6], 4294959104  ;;  %v989_v0 = vmov 0.0   ;;  %v81_v1 = vld [vmem:[%s1314_s2 + $0x38] sm:$0xff]  ;;  %v80_v2 = vld [vmem:[%s1314_s2 + $0x30] sm:$0xff]  ;;  %vm94_vm0 = vcmask 261120  }
  0x1d   :  { %162 = vmatprep.mubr.f32.mxu1 %v989_v0  ;;  %v79_v3 = vld [vmem:[%s1314_s2 + $0x28] sm:$0xff]  ;;  %122 = vmatprep.subr.mxu1 %v81_v1  ;;  %v78_v4 = vld [vmem:[%s1314_s2 + $0x20] sm:$0xff]  ;;  %v77_v5 = vld [vmem:[%s1314_s2 + $0x18] sm:$0xff]  ;;  %vm990_vm1 = vmmov 0  }
  0x1e   :  { %123 = vmatpush1.msra.mxu1 %v80_v2  ;;  %v76_v6 = vld [vmem:[%s1314_s2 + $0x10] sm:$0xff]  ;;  %v75_v7 = vld [vmem:[%s1314_s2 + $0x8] sm:$0xff]  ;;  %v74_v8 = vld [vmem:[%s1314_s2] sm:$0xff] }
  0x1f   :  { %124 = vmatprep.subr.mxu1 %v79_v3  ;;  %v1096_v9 = vld [vmem:[%s1312_s0] sm:$0xff]  ;;  %v203_v10 = vld [vmem:[#allocation2 + $0xf8] sm:$0xff]  ;;  %v202_v11 = vld [vmem:[#allocation2 + $0xf0] sm:$0xff] }
  0x20   :  { %125 = vmatpush1.msra.mxu1 %v78_v4  ;;  %v201_v12 = vld [vmem:[#allocation2 + $0xe8] sm:$0xff]  ;;  %v200_v13 = vld [vmem:[#allocation2 + $0xe0] sm:$0xff]  ;;  %v199_v14 = vld [vmem:[#allocation2 + $0xd8] sm:$0xff] }
  0x21   :  { %126 = vmatprep.subr.mxu1 %v77_v5  ;;  %v198_v15 = vld [vmem:[#allocation2 + $0xd0] sm:$0xff]  ;;  %v197_v16 = vld [vmem:[#allocation2 + $0xc8] sm:$0xff]  ;;  %v196_v17 = vld [vmem:[#allocation2 + $0xc0] sm:$0xff] }
  0x22   :  { %127 = vmatpush1.msra.mxu1 %v76_v6  ;;  %v195_v18 = vld [vmem:[#allocation2 + $0xb8] sm:$0xff]  ;;  %v194_v19 = vld [vmem:[#allocation2 + $0xb0] sm:$0xff]  ;;  %v193_v20 = vld [vmem:[#allocation2 + $0xa8] sm:$0xff] }
  0x23   :  { %128 = vmatprep.subr.mxu1 %v75_v7  ;;  %v192_v21 = vld [vmem:[#allocation2 + $0xa0] sm:$0xff]  ;;  %v191_v22 = vld [vmem:[#allocation2 + $0x98] sm:$0xff]  ;;  %v190_v23 = vld [vmem:[#allocation2 + $0x90] sm:$0xff] }
  0x24   :  { %129 = vmatpush1.msra.mxu1 %v74_v8  ;;  %v189_v24 = vld [vmem:[#allocation2 + $0x88] sm:$0xff]  ;;  %v188_v25 = vld [vmem:[#allocation2 + $0x80] sm:$0xff]  ;;  %v187_v26 = vld [vmem:[#allocation2 + $0x78] sm:$0xff] }
  0x25   :  { %800 = vmatmul.mubr.msk.f32.vlgmr.msra.gmra.mxu1 %vm94_vm0, %v1096_v9  ;;  %236 = vmatprep.subr.mxu1 %v203_v10  ;;  %v186_v27 = vld [vmem:[#allocation2 + $0x70] sm:$0xff]  ;;  %v185_v28 = vld [vmem:[#allocation2 + $0x68] sm:$0xff]  ;;  %v184_v30 = vld [vmem:[#allocation2 + $0x60] sm:$0xff] }
  0x26   :  { %237 = vmatpush1.msra.mxu1 %v202_v11  ;;  %v171_v29 = vld [vmem:[%s1313_s1 + $0x8] sm:$0xff]  ;;  %v183_v31 = vld [vmem:[#allocation2 + $0x58] sm:$0xff]  ;;  %v182_v32 = vld [vmem:[#allocation2 + $0x50] sm:$0xff] }
  0x27   :  { %238 = vmatprep.subr.mxu1 %v201_v12  ;;  %300 = vmatprep.mubr.f32.mxu1 %v171_v29  ;;  %v181_v33 = vld [vmem:[#allocation2 + $0x48] sm:$0xff]  ;;  %v180_v34 = vld [vmem:[#allocation2 + $0x40] sm:$0xff]  ;;  %v179_v35 = vld [vmem:[#allocation2 + $0x38] sm:$0xff] }
  0x28   :  { %239 = vmatpush1.msra.mxu1 %v200_v13  ;;  %v178_v36 = vld [vmem:[#allocation2 + $0x30] sm:$0xff]  ;;  %v177_v37 = vld [vmem:[#allocation2 + $0x28] sm:$0xff]  ;;  %v176_v38 = vld [vmem:[#allocation2 + $0x20] sm:$0xff] }
  0x29   :  { %240 = vmatprep.subr.mxu1 %v199_v14  ;;  %v175_v39 = vld [vmem:[#allocation2 + $0x18] sm:$0xff]  ;;  %v174_v40 = vld [vmem:[#allocation2 + $0x10] sm:$0xff]  ;;  %v173_v41 = vld [vmem:[#allocation2 + $0x8] sm:$0xff] }
  0x2a   :  { %241 = vmatpush1.msra.mxu1 %v198_v15  ;;  %v172_v42 = vld [vmem:[#allocation2] sm:$0xff]  ;;  %v235_v43 = vld [vmem:[#allocation2 + $0x1f8] sm:$0xff]  ;;  %v234_v44 = vld [vmem:[#allocation2 + $0x1f0] sm:$0xff] }
  0x2b   :  { %242 = vmatprep.subr.mxu1 %v197_v16  ;;  %v233_v45 = vld [vmem:[#allocation2 + $0x1e8] sm:$0xff]  ;;  %v232_v46 = vld [vmem:[#allocation2 + $0x1e0] sm:$0xff]  ;;  %v231_v47 = vld [vmem:[#allocation2 + $0x1d8] sm:$0xff] }
  0x2c   :  { %243 = vmatpush1.msra.mxu1 %v196_v17  ;;  %v230_v48 = vld [vmem:[#allocation2 + $0x1d0] sm:$0xff]  ;;  %v229_v49 = vld [vmem:[#allocation2 + $0x1c8] sm:$0xff]  ;;  %v228_v50 = vld [vmem:[#allocation2 + $0x1c0] sm:$0xff] }
  0x2d   :  { %244 = vmatprep.subr.mxu1 %v195_v18  ;;  %v227_v51 = vld [vmem:[#allocation2 + $0x1b8] sm:$0xff]  ;;  %v226_v52 = vld [vmem:[#allocation2 + $0x1b0] sm:$0xff]  ;;  %v225_v53 = vld [vmem:[#allocation2 + $0x1a8] sm:$0xff] }
  0x2e   :  { %245 = vmatpush1.msra.mxu1 %v194_v19  ;;  %v224_v54 = vld [vmem:[#allocation2 + $0x1a0] sm:$0xff]  ;;  %v223_v55 = vld [vmem:[#allocation2 + $0x198] sm:$0xff]  ;;  %v222_v56 = vld [vmem:[#allocation2 + $0x190] sm:$0xff] }
  0x2f   :  { %246 = vmatprep.subr.mxu1 %v193_v20  ;;  %v221_v57 = vld [vmem:[#allocation2 + $0x188] sm:$0xff]  ;;  %v220_v58 = vld [vmem:[#allocation2 + $0x180] sm:$0xff]  ;;  %v219_v59 = vld [vmem:[#allocation2 + $0x178] sm:$0xff] }
  0x30   :  { %247 = vmatpush1.msra.mxu1 %v192_v21  ;;  %v218_v60 = vld [vmem:[#allocation2 + $0x170] sm:$0xff]  ;;  %v217_v61 = vld [vmem:[#allocation2 + $0x168] sm:$0xff]  ;;  %v216_v62 = vld [vmem:[#allocation2 + $0x160] sm:$0xff] }
  0x31   :  { %248 = vmatprep.subr.mxu1 %v191_v22  ;;  %v215_v63 = vld [vmem:[#allocation2 + $0x158] sm:$0xff]  ;;  %v214_v1 = vld [vmem:[#allocation2 + $0x150] sm:$0xff]  ;;  %v213_v2 = vld [vmem:[#allocation2 + $0x148] sm:$0xff] }
  0x32   :  { %249 = vmatpush1.msra.mxu1 %v190_v23  ;;  %v212_v3 = vld [vmem:[#allocation2 + $0x140] sm:$0xff]  ;;  %v211_v4 = vld [vmem:[#allocation2 + $0x138] sm:$0xff]  ;;  %v210_v5 = vld [vmem:[#allocation2 + $0x130] sm:$0xff] }
  0x33   :  { %250 = vmatprep.subr.mxu1 %v189_v24  ;;  %v209_v6 = vld [vmem:[#allocation2 + $0x128] sm:$0xff]  ;;  %v208_v7 = vld [vmem:[#allocation2 + $0x120] sm:$0xff]  ;;  %v207_v8 = vld [vmem:[#allocation2 + $0x118] sm:$0xff] }
  0x34   :  { %251 = vmatpush1.msra.mxu1 %v188_v25  ;;  %v206_v10 = vld [vmem:[#allocation2 + $0x110] sm:$0xff]  ;;  %v205_v11 = vld [vmem:[#allocation2 + $0x108] sm:$0xff]  ;;  %v204_v12 = vld [vmem:[#allocation2 + $0x100] sm:$0xff] }
  0x35   :  { %252 = vmatprep.subr.mxu1 %v187_v26  ;;  %v170_v13 = vld [vmem:[%s1313_s1] sm:$0xff]  ;;  %v342_v14 = vld [vmem:[#allocation5 + $0xf8] sm:$0xff]  ;;  %v341_v15 = vld [vmem:[#allocation5 + $0xf0] sm:$0xff] }
  0x36   :  { %253 = vmatpush1.msra.mxu1 %v186_v27  ;;  %v340_v16 = vld [vmem:[#allocation5 + $0xe8] sm:$0xff]  ;;  %387 = vmatprep.subr.mxu0 %v342_v14  ;;  %v339_v17 = vld [vmem:[#allocation5 + $0xe0] sm:$0xff]  ;;  %v338_v18 = vld [vmem:[#allocation5 + $0xd8] sm:$0xff] }
  0x37   :  { %254 = vmatprep.subr.mxu1 %v185_v28  ;;  %388 = vmatpush1.msra.mxu0 %v341_v15  ;;  %v337_v19 = vld [vmem:[#allocation5 + $0xd0] sm:$0xff]  ;;  %v336_v20 = vld [vmem:[#allocation5 + $0xc8] sm:$0xff]  ;;  %v335_v21 = vld [vmem:[#allocation5 + $0xc0] sm:$0xff] }
  0x38   :  { %255 = vmatpush1.msra.mxu1 %v184_v30  ;;  %389 = vmatprep.subr.mxu0 %v340_v16  ;;  %v334_v22 = vld [vmem:[#allocation5 + $0xb8] sm:$0xff]  ;;  %v333_v23 = vld [vmem:[#allocation5 + $0xb0] sm:$0xff]  ;;  %v332_v24 = vld [vmem:[#allocation5 + $0xa8] sm:$0xff] }
  0x39   :  { %256 = vmatprep.subr.mxu1 %v183_v31  ;;  %390 = vmatpush1.msra.mxu0 %v339_v17  ;;  %v331_v25 = vld [vmem:[#allocation5 + $0xa0] sm:$0xff]  ;;  %v330_v26 = vld [vmem:[#allocation5 + $0x98] sm:$0xff]  ;;  %v329_v27 = vld [vmem:[#allocation5 + $0x90] sm:$0xff] }
  0x3a   :  { %257 = vmatpush1.msra.mxu1 %v182_v32  ;;  %391 = vmatprep.subr.mxu0 %v338_v18  ;;  %v328_v28 = vld [vmem:[#allocation5 + $0x88] sm:$0xff]  ;;  %v327_v29 = vld [vmem:[#allocation5 + $0x80] sm:$0xff]  ;;  %v326_v30 = vld [vmem:[#allocation5 + $0x78] sm:$0xff] }
  0x3b   :  { %258 = vmatprep.subr.mxu1 %v181_v33  ;;  %392 = vmatpush1.msra.mxu0 %v337_v19  ;;  %v325_v31 = vld [vmem:[#allocation5 + $0x70] sm:$0xff]  ;;  %v324_v32 = vld [vmem:[#allocation5 + $0x68] sm:$0xff]  ;;  %v323_v33 = vld [vmem:[#allocation5 + $0x60] sm:$0xff] }
  0x3c   :  { %259 = vmatpush1.msra.mxu1 %v180_v34  ;;  %393 = vmatprep.subr.mxu0 %v336_v20  ;;  %v322_v34 = vld [vmem:[#allocation5 + $0x58] sm:$0xff]  ;;  %v344_v14 = vld [vmem:[#allocation5 + $0x108] sm:$0xff]  ;;  %v343_v15 = vld [vmem:[#allocation5 + $0x100] sm:$0xff] }
  0x3d   :  { %260 = vmatprep.subr.mxu1 %v179_v35  ;;  %394 = vmatpush1.msra.mxu0 %v335_v21  ;;  %v321_v35 = vld [vmem:[#allocation5 + $0x50] sm:$0xff]  ;;  %v491_v16 = vld [vmem:[%s1319_s7 + $0xf8] sm:$0xff]  ;;  %v489_v20 = vld [vmem:[%s1319_s7 + $0xe8] sm:$0xff] }
  0x3e   :  { %261 = vmatpush1.msra.mxu1 %v178_v36  ;;  %395 = vmatprep.subr.mxu0 %v334_v22  ;;  %v320_v36 = vld [vmem:[#allocation5 + $0x48] sm:$0xff]  ;;  %v475_v17 = vld [vmem:[%s1319_s7 + $0x78] sm:$0xff]  ;;  %v490_v18 = vld [vmem:[%s1319_s7 + $0xf0] sm:$0xff] }
  0x3f   :  { %262 = vmatprep.subr.mxu1 %v177_v37  ;;  %396 = vmatpush1.msra.mxu0 %v333_v23  ;;  %v319_v37 = vld [vmem:[#allocation5 + $0x40] sm:$0xff]  ;;  %v474_v19 = vld [vmem:[%s1319_s7 + $0x70] sm:$0xff]  ;;  %v473_v21 = vld [vmem:[%s1319_s7 + $0x68] sm:$0xff] }
  0x40   :  { %263 = vmatpush1.msra.mxu1 %v176_v38  ;;  %397 = vmatprep.subr.mxu0 %v332_v24  ;;  %v318_v38 = vld [vmem:[#allocation5 + $0x38] sm:$0xff]  ;;  %v488_v22 = vld [vmem:[%s1319_s7 + $0xe0] sm:$0xff] }
  0x41   :  { %264 = vmatprep.subr.mxu1 %v175_v39  ;;  %398 = vmatpush1.msra.mxu0 %v331_v25  ;;  %v317_v39 = vld [vmem:[#allocation5 + $0x30] sm:$0xff]  ;;  %v472_v23 = vld [vmem:[%s1319_s7 + $0x60] sm:$0xff]  ;;  %v487_v24 = vld [vmem:[%s1319_s7 + $0xd8] sm:$0xff] }
  0x42   :  { %265 = vmatpush1.msra.mxu1 %v174_v40  ;;  %399 = vmatprep.subr.mxu0 %v330_v26  ;;  %v316_v40 = vld [vmem:[#allocation5 + $0x28] sm:$0xff]  ;;  %v471_v25 = vld [vmem:[%s1319_s7 + $0x58] sm:$0xff]  ;;  %v486_v26 = vld [vmem:[%s1319_s7 + $0xd0] sm:$0xff] }
  0x43   :  { %266 = vmatprep.subr.mxu1 %v173_v41  ;;  %400 = vmatpush1.msra.mxu0 %v329_v27  ;;  %v315_v41 = vld [vmem:[#allocation5 + $0x20] sm:$0xff]  ;;  %v470_v27 = vld [vmem:[%s1319_s7 + $0x50] sm:$0xff] }
  0x44   :  { %267 = vmatpush1.msra.mxu1 %v172_v42  ;;  %401 = vmatprep.subr.mxu0 %v328_v28  ;;  %v314_v42 = vld [vmem:[#allocation5 + $0x18] sm:$0xff]  ;;  %v485_v28 = vld [vmem:[%s1319_s7 + $0xc8] sm:$0xff] }
  0x45   :  { %268 = vmatprep.subr.mxu1 %v235_v43  ;;  %402 = vmatpush1.msra.mxu0 %v327_v29  ;;  %v313_v43 = vld [vmem:[#allocation5 + $0x10] sm:$0xff]  ;;  %v469_v29 = vld [vmem:[%s1319_s7 + $0x48] sm:$0xff] }
  0x46   :  { %269 = vmatpush2.msra.mxu1 %v234_v44  ;;  %403 = vmatprep.subr.mxu0 %v326_v30  ;;  %v312_v44 = vld [vmem:[#allocation5 + $0x8] sm:$0xff]  ;;  %v484_v30 = vld [vmem:[%s1319_s7 + $0xc0] sm:$0xff] }
  0x47   :  { %270 = vmatprep.subr.mxu1 %v233_v45  ;;  %404 = vmatpush1.msra.mxu0 %v325_v31  ;;  %v311_v45 = vld [vmem:[#allocation5] sm:$0xff] }
  0x48   :  { %271 = vmatpush2.msra.mxu1 %v232_v46  ;;  %405 = vmatprep.subr.mxu0 %v324_v32  ;;  %v374_v46 = vld [vmem:[#allocation5 + $0x1f8] sm:$0xff]  ;;  %v468_v31 = vld [vmem:[%s1319_s7 + $0x40] sm:$0xff] }
  0x49   :  { %272 = vmatprep.subr.mxu1 %v231_v47  ;;  %406 = vmatpush1.msra.mxu0 %v323_v33  ;;  %v373_v47 = vld [vmem:[#allocation5 + $0x1f0] sm:$0xff]  ;;  %v483_v32 = vld [vmem:[%s1319_s7 + $0xb8] sm:$0xff] }
  0x4a   :  { %273 = vmatpush2.msra.mxu1 %v230_v48  ;;  %407 = vmatprep.subr.mxu0 %v322_v34  ;;  %v372_v48 = vld [vmem:[#allocation5 + $0x1e8] sm:$0xff]  ;;  %v467_v33 = vld [vmem:[%s1319_s7 + $0x38] sm:$0xff]  ;;  %v482_v34 = vld [vmem:[%s1319_s7 + $0xb0] sm:$0xff] }
  0x4b   :  { %274 = vmatprep.subr.mxu1 %v229_v49  ;;  %408 = vmatpush1.msra.mxu0 %v321_v35  ;;  %v371_v49 = vld [vmem:[#allocation5 + $0x1e0] sm:$0xff]  ;;  %v466_v35 = vld [vmem:[%s1319_s7 + $0x30] sm:$0xff] }
  0x4c   :  { %275 = vmatpush2.msra.mxu1 %v228_v50  ;;  %409 = vmatprep.subr.mxu0 %v320_v36  ;;  %v370_v50 = vld [vmem:[#allocation5 + $0x1d8] sm:$0xff]  ;;  %v481_v36 = vld [vmem:[%s1319_s7 + $0xa8] sm:$0xff] }
  0x4d   :  { %276 = vmatprep.subr.mxu1 %v227_v51  ;;  %410 = vmatpush1.msra.mxu0 %v319_v37  ;;  %v369_v51 = vld [vmem:[#allocation5 + $0x1d0] sm:$0xff]  ;;  %v465_v37 = vld [vmem:[%s1319_s7 + $0x28] sm:$0xff] }
  0x4e   :  { %277 = vmatpush2.msra.mxu1 %v226_v52  ;;  %411 = vmatprep.subr.mxu0 %v318_v38  ;;  %v368_v52 = vld [vmem:[#allocation5 + $0x1c8] sm:$0xff]  ;;  %v480_v38 = vld [vmem:[%s1319_s7 + $0xa0] sm:$0xff] }
  0x4f   :  { %278 = vmatprep.subr.mxu1 %v225_v53  ;;  %412 = vmatpush1.msra.mxu0 %v317_v39  ;;  %v367_v53 = vld [vmem:[#allocation5 + $0x1c0] sm:$0xff] }
  0x50   :  { %279 = vmatpush2.msra.mxu1 %v224_v54  ;;  %413 = vmatprep.subr.mxu0 %v316_v40  ;;  %v366_v54 = vld [vmem:[#allocation5 + $0x1b8] sm:$0xff]  ;;  %v464_v39 = vld [vmem:[%s1319_s7 + $0x20] sm:$0xff]  ;;  %v84_v40 = vlaneseq }
  0x51   :  { %280 = vmatprep.subr.mxu1 %v223_v55  ;;  %414 = vmatpush1.msra.mxu0 %v315_v41  ;;  %v365_v55 = vld [vmem:[#allocation5 + $0x1b0] sm:$0xff] }
  0x52   :  { %281 = vmatpush2.msra.mxu1 %v222_v56  ;;  %415 = vmatprep.subr.mxu0 %v314_v42  ;;  %v364_v56 = vld [vmem:[#allocation5 + $0x1a8] sm:$0xff]  ;;  %v85_v41 = vshrl.u32 %v84_v40, 7  ;;  %v676_v40 = vld [vmem:[%s1323_s11 + $0x38] sm:$0xff] }
  0x53   :  { %282 = vmatprep.subr.mxu1 %v221_v57  ;;  %416 = vmatpush1.msra.mxu0 %v313_v43  ;;  %v363_v57 = vld [vmem:[#allocation5 + $0x1a0] sm:$0xff] }
  0x54   :  { %283 = vmatpush2.msra.mxu1 %v220_v58  ;;  %417 = vmatprep.subr.mxu0 %v312_v44  ;;  %v362_v58 = vld [vmem:[#allocation5 + $0x198] sm:$0xff]  ;;  %v86_v42 = vsub.s32 0, %v85_v41  ;;  %v82_v43 = vld [vmem:[%s1316_s4] sm:$0x3]  ;;  %v90_v44 = vsub.s32 1, %v85_v41  ;;  %v675_v41 = vld [vmem:[%s1323_s11 + $0x30] sm:$0xff] }
  0x55   :  { %284 = vmatprep.subr.mxu1 %v219_v59  ;;  %418 = vmatpush1.msra.mxu0 %v311_v45  ;;  %v361_v59 = vld [vmem:[#allocation5 + $0x190] sm:$0xff] }
  0x56   :  { %285 = vmatpush2.msra.mxu1 %v218_v60  ;;  %419 = vmatprep.subr.mxu0 %v374_v46  ;;  %v360_v60 = vld [vmem:[#allocation5 + $0x188] sm:$0xff]  ;;  %v87_v46 = vrot.slane %v82_v43, %v86_v42 }
  0x57   :  { %286 = vmatprep.subr.mxu1 %v217_v61  ;;  %420 = vmatpush2.msra.mxu0 %v373_v47  ;;  %v359_v61 = vld [vmem:[#allocation5 + $0x180] sm:$0xff]  ;;  %v91_v47 = vrot.slane %v82_v43, %v90_v44 }
  0x58   :  { %287 = vmatpush2.msra.mxu1 %v216_v62  ;;  %421 = vmatprep.subr.mxu0 %v372_v48  ;;  %v358_v62 = vld [vmem:[#allocation5 + $0x178] sm:$0xff]  ;;  %v673_v43 = vld [vmem:[%s1323_s11 + $0x20] sm:$0xff] }
  0x59   :  { %288 = vmatprep.subr.mxu1 %v215_v63  ;;  %422 = vmatpush2.msra.mxu0 %v371_v49  ;;  %v357_v63 = vld [vmem:[#allocation5 + $0x170] sm:$0xff] }
  0x5a   :  { %289 = vmatpush2.msra.mxu1 %v214_v1  ;;  %423 = vmatprep.subr.mxu0 %v370_v50  ;;  %v356_v1 = vld [vmem:[#allocation5 + $0x168] sm:$0xff] }
  0x5b   :  { %290 = vmatprep.subr.mxu1 %v213_v2  ;;  %424 = vmatpush2.msra.mxu0 %v369_v51  ;;  %v355_v2 = vld [vmem:[#allocation5 + $0x160] sm:$0xff] }
  0x5c   :  { %291 = vmatpush2.msra.mxu1 %v212_v3  ;;  %425 = vmatprep.subr.mxu0 %v368_v52  ;;  %v354_v3 = vld [vmem:[#allocation5 + $0x158] sm:$0xff] }
  0x5d   :  { %292 = vmatprep.subr.mxu1 %v211_v4  ;;  %426 = vmatpush2.msra.mxu0 %v367_v53  ;;  %v353_v4 = vld [vmem:[#allocation5 + $0x150] sm:$0xff] }
  0x5e   :  { %293 = vmatpush2.msra.mxu1 %v210_v5  ;;  %427 = vmatprep.subr.mxu0 %v366_v54  ;;  %v352_v5 = vld [vmem:[#allocation5 + $0x148] sm:$0xff] }
  0x5f   :  { %294 = vmatprep.subr.mxu1 %v209_v6  ;;  %428 = vmatpush2.msra.mxu0 %v365_v55  ;;  %v351_v6 = vld [vmem:[#allocation5 + $0x140] sm:$0xff] }
  0x60   :  { %295 = vmatpush2.msra.mxu1 %v208_v7  ;;  %429 = vmatprep.subr.mxu0 %v364_v56  ;;  %v350_v7 = vld [vmem:[#allocation5 + $0x138] sm:$0xff] }
  0x61   :  { %296 = vmatprep.subr.mxu1 %v207_v8  ;;  %430 = vmatpush2.msra.mxu0 %v363_v57  ;;  %v349_v8 = vld [vmem:[#allocation5 + $0x130] sm:$0xff]  ;;  %v479_v57 = vld [vmem:[%s1319_s7 + $0x98] sm:$0xff] }
  0x62   :  { %297 = vmatpush2.msra.mxu1 %v206_v10  ;;  %431 = vmatprep.subr.mxu0 %v362_v58  ;;  %v348_v10 = vld [vmem:[#allocation5 + $0x128] sm:$0xff]  ;;  %v463_v58 = vld [vmem:[%s1319_s7 + $0x18] sm:$0xff] }
  0x63   :  { %298 = vmatprep.subr.mxu1 %v205_v11  ;;  %432 = vmatpush2.msra.mxu0 %v361_v59  ;;  %v347_v11 = vld [vmem:[#allocation5 + $0x120] sm:$0xff]  ;;  %v478_v59 = vld [vmem:[%s1319_s7 + $0x90] sm:$0xff] }
  0x64   :  { %299 = vmatpush2.msra.mxu1 %v204_v12  ;;  %433 = vmatprep.subr.mxu0 %v360_v60  ;;  %v346_v12 = vld [vmem:[#allocation5 + $0x118] sm:$0xff]  ;;  %v462_v60 = vld [vmem:[%s1319_s7 + $0x10] sm:$0xff] }
  0x65   :  { %301 = vmatmul.mubr.f32.vlgmr.msra.gmra.mxu1 %v170_v13  ;;  %434 = vmatpush2.msra.mxu0 %v359_v61  ;;  %v345_v13 = vld [vmem:[#allocation5 + $0x110] sm:$0xff]  ;;  %v477_v61 = vld [vmem:[%s1319_s7 + $0x88] sm:$0xff] }
  0x66   :  { %435 = vmatprep.subr.mxu0 %v358_v62  ;;  %805 = vmatprep.subr.mxu1 %v491_v16  ;;  %v461_v62 = vld [vmem:[%s1319_s7 + $0x8] sm:$0xff] }
  0x67   :  { %436 = vmatpush2.msra.mxu0 %v357_v63  ;;  %806 = vmatpush3.msra.mxu1 %v475_v17  ;;  %v476_v63 = vld [vmem:[%s1319_s7 + $0x80] sm:$0xff] }
  0x68   :  { %437 = vmatprep.subr.mxu0 %v356_v1  ;;  %807 = vmatprep.subr.mxu1 %v490_v18  ;;  %v460_v1 = vld [vmem:[%s1319_s7] sm:$0xff] }
  0x69   :  { %438 = vmatpush2.msra.mxu0 %v355_v2  ;;  %808 = vmatpush3.msra.mxu1 %v474_v19  ;;  %v375_v2 = vld [vmem:[%s1318_s6] sm:$0x3] }
  0x6a   :  { %439 = vmatprep.subr.mxu0 %v354_v3  ;;  %809 = vmatprep.subr.mxu1 %v489_v20  ;;  %v380_v3 = vrot.slane %v375_v2, %v86_v42  ;;  %v674_v42 = vld [vmem:[%s1323_s11 + $0x28] sm:$0xff] }
  0x6b   :  { %440 = vmatpush2.msra.mxu0 %v353_v4  ;;  %810 = vmatpush3.msra.mxu1 %v473_v21  ;;  %v384_v4 = vrot.slane %v375_v2, %v90_v44  ;;  %v672_v44 = vld [vmem:[%s1323_s11 + $0x18] sm:$0xff] }
  0x6c   :  { %441 = vmatprep.subr.mxu0 %v352_v5  ;;  %811 = vmatprep.subr.mxu1 %v488_v22 }
  0x6d   :  { %442 = vmatpush2.msra.mxu0 %v351_v6  ;;  %812 = vmatpush3.msra.mxu1 %v472_v23 }
  0x6e   :  { %443 = vmatprep.subr.mxu0 %v350_v7  ;;  %813 = vmatprep.subr.mxu1 %v487_v24  ;;  %v587_v24 = vld [vmem:[%s1321_s9 + $0x18] sm:$0xff] }
  0x6f   :  { %444 = vmatpush2.msra.mxu0 %v349_v8  ;;  %814 = vmatpush3.msra.mxu1 %v471_v25  ;;  %v586_v25 = vld [vmem:[%s1321_s9 + $0x10] sm:$0xff] }
  0x70   :  { %445 = vmatprep.subr.mxu0 %v348_v10  ;;  %815 = vmatprep.subr.mxu1 %v486_v26  ;;  %v584_v26 = vld [vmem:[%s1321_s9] sm:$0xff] }
  0x71   :  { %446 = vmatpush2.msra.mxu0 %v347_v11  ;;  %816 = vmatpush3.msra.mxu1 %v470_v27 }
  0x72   :  { %447 = vmatprep.subr.mxu0 %v346_v12  ;;  %817 = vmatprep.subr.mxu1 %v485_v28 }
  0x73   :  { %448 = vmatpush2.msra.mxu0 %v345_v13  ;;  %818 = vmatpush3.msra.mxu1 %v469_v29  ;;  %v801_v13 = vld [vmem:[%s1320_s8] ss:$0 sm:$0xff] }
  0x74   :  { %449 = vmatprep.subr.mxu0 %v344_v14  ;;  %819 = vmatprep.subr.mxu1 %v484_v30 }
  0x75   :  { %450 = vmatpush2.msra.mxu0 %v343_v15  ;;  %820 = vmatpush3.msra.mxu1 %v468_v31 }
  0x76   :  { %862 = vmatprep.subr.mxu0 %v989_v0  ;;  %821 = vmatprep.subr.mxu1 %v483_v32  ;;  %v684_v32 = vld [vmem:[%s1323_s11 + $0x78] sm:$0xff] }
  0x77   :  { %822 = vmatpush3.msra.mxu1 %v467_v33  ;;  %v683_v33 = vld [vmem:[%s1323_s11 + $0x70] sm:$0xff] }
  0x78   :  { %823 = vmatprep.subr.mxu1 %v482_v34  ;;  %v682_v34 = vld [vmem:[%s1323_s11 + $0x68] sm:$0xff] }
  0x79   :  { %824 = vmatpush3.msra.mxu1 %v466_v35  ;;  %v681_v35 = vld [vmem:[%s1323_s11 + $0x60] sm:$0xff] }
  0x7a   :  { %825 = vmatprep.subr.mxu1 %v481_v36  ;;  %v680_v36 = vld [vmem:[%s1323_s11 + $0x58] sm:$0xff] }
  0x7b   :  { %826 = vmatpush3.msra.mxu1 %v465_v37  ;;  %v679_v37 = vld [vmem:[%s1323_s11 + $0x50] sm:$0xff] }
  0x7c   :  { %827 = vmatprep.subr.mxu1 %v480_v38  ;;  %v678_v38 = vld [vmem:[%s1323_s11 + $0x48] sm:$0xff] }
  0x7d   :  { %828 = vmatpush3.msra.mxu1 %v464_v39  ;;  %v677_v39 = vld [vmem:[%s1323_s11 + $0x40] sm:$0xff] }
  0x7e   :  { %829 = vmatprep.subr.mxu1 %v479_v57 }
  0x7f   :  { %830 = vmatpush3.msra.mxu1 %v463_v58 }
  0x80   :  { %831 = vmatprep.subr.mxu1 %v478_v59 }
  0x81   :  { %832 = vmatpush3.msra.mxu1 %v462_v60 }
  0x82   :  { %833 = vmatprep.subr.mxu1 %v477_v61 }
  0x83   :  { %834 = vmatpush3.msra.mxu1 %v461_v62 }
  0x84   :  { %835 = vmatprep.subr.mxu1 %v476_v63 }
  0x85   :  { %836 = vmatpush3.msra.mxu1 %v460_v1 }
  0xe5   :  { %v164_v45 = vpop.f32.mrf.mxu1 }
  0xe6   :  { %v165_v49 = vadd.f32 %v164_v45, %v87_v46  ;;  %v671_v45 = vld [vmem:[%s1323_s11 + $0x10] sm:$0xff]  ;;  %v670_v46 = vld [vmem:[%s1323_s11 + $0x8] sm:$0xff] }
  0xe7   :  { %v166_v48 = vpop.f32.mrf.mxu1 }
  0xe8   :  { %v167_v51 = vadd.f32 %v166_v48, %v91_v47  ;;  %v669_v47 = vld [vmem:[%s1323_s11] sm:$0xff] }
  0xe9   :  { %v802_v48 = vld [vmem:[%s1322_s10] ss:$0 sm:$0xff]  ;;  %s991_s10 = smov [#allocation7]  }
  0xea   :  { %s790_s11 = sshll.u32 %s991_s10, 4  ;;  %s791_s11 = int_to_ptr.vmem [resolvable:$true] %s790_s11 }
  0xeb   :  { %p964_p11 = scmp.lt.s32.totalorder %s791_s11, %s791_s11 }
 0x125   :  { %v302_v50 = vpop.f32.mrf.mxu1 }
 0x126   :  { %v307_v52 = vadd.f32 %v302_v50, %v165_v49 }
 0x127   :  { %v304_v53 = vpop.f32.mrf.mxu1 }
 0x128   :  { %v308_v54 = vadd.f32 %v304_v53, %v167_v51  ;;  %v309_v56 = vmax.f32 %v307_v52, 0.0  ;;  %v804_v53 = vld [vmem:[%s1324_s12] ss:$0 sm:$0xff]  ;;  %s959_s12 = scalar_lea.vmem %s791_s11, 128 }
 0x129   :  { %p960_p10 = scmp.ne.s32.totalorder %s791_s11, %s959_s12  ;;  %p965_p12 = scmp.lt.s32.totalorder %s959_s12, %s959_s12 }
 0x12a   :  { %v310_v55 = vmax.f32 %v308_v54, 0.0 }
 0x12b   :  { %p966_p13 = por %p965_p12, %p964_p11 }
 0x12c   :  { %451 = vmatprep.mubr.f32.mxu0 %v310_v55 }
 0x12d   :  { %452 = vmatmul.mubr.f32.vlgmr.msra.gmra.mxu0 %v309_v56  ;;  %p967_p0 = pnand %p966_p13, %p960_p10 }
 0x12e   :  { %863 = vmatpush3.msra.mxu0 %v587_v24  ;;  %870 = vmatprep.mubr.msk.f32.mxu0 %vm990_vm1, %v989_v0 }
 0x12f   :  { %864 = vmatprep.subr.mxu0 %v989_v0 }
 0x130   :  { %865 = vmatpush3.msra.mxu0 %v586_v25 }
 0x131   :  { %866 = vmatprep.subr.mxu0 %v989_v0 }
 0x1ed   :  { %v453_v5 = vpop.f32.mrf.mxu0 }
 0x1ee   :  { %v454_v6 = vadd.f32 %v453_v5, %v380_v3 }
 0x1ef   :  { %v455_v7 = vpop.f32.mrf.mxu0 }
 0x1f0   :  { %v456_v8 = vadd.f32 %v455_v7, %v384_v4  ;;  %v458_v11 = vmax.f32 %v454_v6, 0.0 }
 0x1f2   :  { %v459_v10 = vmax.f32 %v456_v8, 0.0 }
 0x1f4   :  { %556 = vmatprep.mubr.f32.mxu1 %v459_v10 }
 0x1f5   :  { %557 = vmatmul.mubr.f32.vlgmr.msra.gmra.mxu1 %v458_v11 }
 0x2b5   :  { %v837_v12 = vpop.f32.mrf.mxu1 }
 0x2b7   :  { %v838_v14 = vpop.f32.mrf.mxu1 }
 0x2b8   :  { %v839_v15 = vadd.f32 %v838_v14, %v837_v12 }
 0x2ba   :  { %v568_v16 = vadd.f32 %v839_v15, %v801_v13 }
 0x2bc   :  { %v569_v17 = vadd.f32 %v568_v16, %v1096_v9  ;;  %v585_v9 = vld [vmem:[%s1321_s9 + $0x8] sm:$0xff] }
 0x2bd   :  { %867 = vmatpush3.msra.mxu0 %v585_v9 }
 0x2be   :  { %v570_v18 = vsel %vm94_vm0, %v569_v17, 0.0  ;;  %868 = vmatprep.subr.mxu0 %v989_v0 }
 0x2bf   :  { %571 = vadd.xlane.f32.xlu0 %v570_v18  ;;  %869 = vmatpush3.msra.mxu0 %v584_v26 }
 0x2c0   :  { %873 = vmatprep.subr.mxu0 %v989_v0 }
 0x348   :  { %v572_v19 = vpop.xlane.xlu0 %571 }
 0x349   :  { %v574_v20 = vmul.f32 0.03125, %v572_v19 }
 0x34b   :  { %v575_v21 = vsub.f32 %v569_v17, %v574_v20 }
 0x34d   :  { %v576_v22 = vmul.f32 %v575_v21, %v575_v21 }
 0x34f   :  { %v577_v23 = vsel %vm94_vm0, %v576_v22, 0.0 }
 0x350   :  { %578 = vadd.xlane.f32.xlu0 %v577_v23 }
 0x3d9   :  { %v579_v27 = vpop.xlane.xlu0 %578 }
 0x3da   :  { %v580_v28 = vmul.f32 0.03125, %v579_v27 }
 0x3dc   :  { %v581_v29 = vadd.f32 1e-05, %v580_v28 }
 0x3de   :  { %915 = vrsqrt.f32 %v581_v29 }
 0x3eb   :  { %v916_v30 = vpop.eup %915 }
 0x3ec   :  { %v583_v31 = vmul.f32 %v916_v30, %v575_v21 }
 0x3ee   :  { %871 = vmatmul.mubr.msk.f32.vlgmr.msra.gmra.mxu0 %vm94_vm0, %v583_v31 }
 0x3ef   :  { %874 = vmatpush3.msra.mxu0 %v684_v32  ;;  %905 = vmatprep.mubr.msk.f32.mxu0 %vm990_vm1, %v989_v0 }
 0x3f0   :  { %875 = vmatprep.subr.mxu0 %v989_v0 }
 0x3f1   :  { %876 = vmatpush3.msra.mxu0 %v683_v33 }
 0x3f2   :  { %877 = vmatprep.subr.mxu0 %v989_v0 }
 0x3f3   :  { %878 = vmatpush3.msra.mxu0 %v682_v34 }
 0x3f4   :  { %879 = vmatprep.subr.mxu0 %v989_v0 }
 0x3f5   :  { %880 = vmatpush3.msra.mxu0 %v681_v35 }
 0x3f6   :  { %881 = vmatprep.subr.mxu0 %v989_v0 }
 0x3f7   :  { %882 = vmatpush3.msra.mxu0 %v680_v36 }
 0x3f8   :  { %883 = vmatprep.subr.mxu0 %v989_v0 }
 0x3f9   :  { %884 = vmatpush3.msra.mxu0 %v679_v37 }
 0x3fa   :  { %885 = vmatprep.subr.mxu0 %v989_v0 }
 0x3fb   :  { %886 = vmatpush3.msra.mxu0 %v678_v38 }
 0x3fc   :  { %887 = vmatprep.subr.mxu0 %v989_v0 }
 0x3fd   :  { %888 = vmatpush3.msra.mxu0 %v677_v39 }
 0x3fe   :  { %889 = vmatprep.subr.mxu0 %v989_v0 }
 0x3ff   :  { %890 = vmatpush3.msra.mxu0 %v676_v40 }
 0x400   :  { %891 = vmatprep.subr.mxu0 %v989_v0 }
 0x401   :  { %892 = vmatpush3.msra.mxu0 %v675_v41 }
 0x402   :  { %893 = vmatprep.subr.mxu0 %v989_v0 }
 0x403   :  { %894 = vmatpush3.msra.mxu0 %v674_v42 }
 0x404   :  { %895 = vmatprep.subr.mxu0 %v989_v0 }
 0x405   :  { %896 = vmatpush3.msra.mxu0 %v673_v43 }
 0x406   :  { %897 = vmatprep.subr.mxu0 %v989_v0 }
 0x407   :  { %898 = vmatpush3.msra.mxu0 %v672_v44 }
 0x408   :  { %899 = vmatprep.subr.mxu0 %v989_v0 }
 0x409   :  { %900 = vmatpush3.msra.mxu0 %v671_v45 }
 0x40a   :  { %901 = vmatprep.subr.mxu0 %v989_v0 }
 0x40b   :  { %902 = vmatpush3.msra.mxu0 %v670_v46 }
 0x40c   :  { %903 = vmatprep.subr.mxu0 %v989_v0 }
 0x40d   :  { %904 = vmatpush3.msra.mxu0 %v669_v47 }
 0x4ae   :  { %v664_v49 = vpop.f32.mrf.mxu0 }
 0x4af   :  { %v665_v50 = vadd.f32 %v802_v48, %v664_v49 }
 0x4b0   :  { %v872_v51 = vpop.f32.mrf.mxu0 }
 0x4b1   :  { %v668_v52 = vmax.f32 %v665_v50, 0.0 }
 0x4b3   :  { %906 = vmatmul.mubr.f32.vlgmr.msra.gmra.mxu0 %v668_v52 }
 0x573   :  { %v758_v54 = vpop.f32.mrf.mxu0 }
 0x574   :  { %v759_v0 = vadd.f32 %v804_v53, %v758_v54 }
 0x575   :  { %v907_v55 = vpop.f32.mrf.mxu0 }
 0x576   :  { %v762_v56 = vadd.f32 %v759_v0, %v583_v31 }
 0x578   :  { %v763_v57 = vsel %vm94_vm0, %v762_v56, 0.0 }
 0x579   :  { %764 = vadd.xlane.f32.xlu1 %v763_v57 }
 0x602   :  { %v765_v58 = vpop.xlane.xlu1 %764 }
 0x603   :  { %v766_v59 = vmul.f32 0.03125, %v765_v58 }
 0x605   :  { %v767_v60 = vsub.f32 %v762_v56, %v766_v59 }
 0x607   :  { %v768_v61 = vmul.f32 %v767_v60, %v767_v60 }
 0x609   :  { %v769_v62 = vsel %vm94_vm0, %v768_v61, 0.0 }
 0x60a   :  { %770 = vadd.xlane.f32.xlu1 %v769_v62 }
 0x693   :  { %v771_v63 = vpop.xlane.xlu1 %770 }
 0x694   :  { %v772_v1 = vmul.f32 0.03125, %v771_v63 }
 0x696   :  { %v773_v2 = vadd.f32 1e-05, %v772_v1 }
 0x698   :  { %917 = vrsqrt.f32 %v773_v2 }
 0x6a5   :  { %v918_v3 = vpop.eup %917 }
 0x6a6   :  { %v775_v4 = vmul.f32 %v918_v3, %v767_v60 }
 0x6a8   :  { %v776_v5 = vsel %vm94_vm0, %v775_v4, 0.0 }
 0x6a9   :  { %v777_v6 = vrot.slane %v776_v5, 4 }
 0x6ab   :  { %v778_v7 = vadd.f32 %v777_v6, %v776_v5 }
 0x6ad   :  { %v779_v8 = vrot.slane %v778_v7, 2 }
 0x6af   :  { %v780_v10 = vadd.f32 %v779_v8, %v778_v7 }
 0x6b1   :  { %v781_v11 = vrot.slane %v780_v10, 1 }
 0x6b3   :  { %v782_v12 = vadd.f32 %v781_v11, %v780_v10 }
 0x6b5   :  { %783 = vst.msk [vmem:[#allocation7] sm:$0xff] %vm94_vm0, %v782_v12 }
 0x6b6   :  { %970 = shalt.err (!%p967_p0)
}
 0x6b7   :  { %793 = dma.vmem_to_hbm [thread:$0]  %s791_s11, 128, %s1325_s13, [#allocation4]  }
 0x6b8   :  { %983 = dma.done.wait [#allocation4], 128  }
 0x6b9   :  { %984 = vsyncadd [#allocation4], 4294967168 }
 0x6ba   :  { %797 = vsyncpa [#allocation3], 1 }
 0x6bb   :  { %798 = vsyncpa [#allocation6], 1 }
 0x6bc   :  { %799 = vsyncpa [#allocation4], 1 }

</bundles_post_ra>
